<compile_context>
chip_gen: v5e
topology: v5e:2x2
jax: 0.10.0
libtpu: 0.0.40
codegen_flags: <defaults>
</compile_context>

<pallas_src>
import math

import jax
import jax.numpy as jnp
from jax.experimental import pallas as pl
from jax.experimental.pallas import tpu as pltpu

LEAKY_SLOPE = 0.01        # PyTorch nn.LeakyReLU default negative_slope
BLOCK_B_MAX = 1024        # max batch rows per grid step
SPLIT_B = 256             # past this, split batch into >=2 parallel steps (v7x megacore)


def _leaky_relu(x):
    return jnp.where(x > 0, x, LEAKY_SLOPE * x)


def _round_up(x, m):
    return (x + m - 1) // m * m


def _choose_block_b(B):
    if B < SPLIT_B:
        return B                                   # one resident block (block == array dims)
    half = _round_up((B + 1) // 2, 8)              # >=2 parallel steps for v7x's 2 TCs
    return min(BLOCK_B_MAX, half)


def predictor_kernel(ps_ref, act_ref,
                     w1s_ref, w1a_ref, b1_ref,
                     w2_ref, b2_ref,
                     w3_ref, b3_ref,
                     o_ref):
    """out = LeakyReLU(LeakyReLU([ps,act]@W1+b1)@W2+b2)@W3 + b3 + ps, fully fused."""
    ps = ps_ref[...]                               # (bb, S)  f32
    act = act_ref[...]                             # (bb, A)  f32

    # Layer 1: split matmul replaces the wrapper concat; bf16 operands, f32 accumulate.
    h1 = (jnp.dot(ps.astype(jnp.bfloat16), w1s_ref[...],
                  preferred_element_type=jnp.float32)
          + jnp.dot(act.astype(jnp.bfloat16), w1a_ref[...],
                    preferred_element_type=jnp.float32)
          + b1_ref[...])
    h1 = _leaky_relu(h1).astype(jnp.bfloat16)      # (bb, H1)

    # Layer 2
    h2 = jnp.dot(h1, w2_ref[...], preferred_element_type=jnp.float32) + b2_ref[...]
    h2 = _leaky_relu(h2).astype(jnp.bfloat16)      # (bb, H2)

    # Layer 3 + residual, single store (output is unpadded: width == state_size).
    y = jnp.dot(h2, w3_ref[...], preferred_element_type=jnp.float32) + b3_ref[...]
    o_ref[...] = (y + ps).astype(o_ref.dtype)


def predictor_forward(prev_states, actions, kernel_params):
    """kernel_params = pack_params(make_params(...), state_size)."""
    w1s, w1a, b1, w2, b2, w3, b3 = kernel_params
    ps = prev_states.astype(jnp.float32)
    act = actions.astype(jnp.float32)

    B, S = ps.shape
    A = act.shape[-1]
    H1 = w1s.shape[-1]
    H2 = w2.shape[-1]

    block_b = _choose_block_b(B)
    nb = pl.cdiv(B, block_b)

    row_spec = lambda cols: pl.BlockSpec((block_b, cols), lambda i: (i, 0))
    const_spec = lambda arr: pl.BlockSpec(arr.shape, lambda i: (0, 0))

    flops = 2 * B * ((S + A) * H1 + H1 * H2 + H2 * S)
    bytes_accessed = (4 * B * (S + A)            # inputs (f32)
                      + 4 * B * S                # output (f32)
                      + sum(int(x.size) * x.dtype.itemsize for x in kernel_params))

    out = pl.pallas_call(
        predictor_kernel,
        out_shape=jax.ShapeDtypeStruct((B, S), jnp.float32),
        grid=(nb,),
        in_specs=[
            row_spec(S), row_spec(A),
            const_spec(w1s), const_spec(w1a), const_spec(b1),
            const_spec(w2), const_spec(b2),
            const_spec(w3), const_spec(b3),
        ],
        out_specs=pl.BlockSpec((block_b, S), lambda i: (i, 0)),
        compiler_params=pltpu.CompilerParams(
            dimension_semantics=("parallel",)),
        cost_estimate=pl.CostEstimate(
            flops=flops, transcendentals=0, bytes_accessed=bytes_accessed),
    )(ps, act, w1s, w1a, b1, w2, b2, w3, b3)

    return out


# ---------------- parameters (PyTorch-like init, then packed for the kernel) ----------


def init_linear(key, fan_in, fan_out):
    """U(-1/sqrt(fan_in), 1/sqrt(fan_in)); weight pre-transposed to [in, out]."""
    kw, kb = jax.random.split(key)
    bound = 1.0 / math.sqrt(fan_in)
    w = jax.random.uniform(kw, (fan_in, fan_out), jnp.float32, -bound, bound)
    b = jax.random.uniform(kb, (1, fan_out), jnp.float32, -bound, bound)
    return w, b


def make_params(key, state_size, action_size, hidden1, hidden2):
    k1, k2, k3 = jax.random.split(key, 3)
    w1, b1 = init_linear(k1, state_size + action_size, hidden1)
    w2, b2 = init_linear(k2, hidden1, hidden2)
    w3, b3 = init_linear(k3, hidden2, state_size)
    return (w1, b1, w2, b2, w3, b3)


def pack_params(params, state_size):
    """One-time packing: split W1 (avoids runtime concat), cast weights to bf16
    (MXU operands); biases stay f32 (added to the f32 accumulator). No padding."""
    w1, b1, w2, b2, w3, b3 = params
    w1s = w1[:state_size].astype(jnp.bfloat16)     # (S,  H1)
    w1a = w1[state_size:].astype(jnp.bfloat16)     # (A,  H1)
    return (w1s, w1a, b1,
            w2.astype(jnp.bfloat16), b2,
            w3.astype(jnp.bfloat16), b3)


# ---------------- references -----------------------------------------------------------


def reference_forward_f32(prev_states, actions, params):
    """Pure-f32 reference matching the PyTorch module semantics exactly."""
    w1, b1, w2, b2, w3, b3 = params
    x = jnp.concatenate([prev_states, actions], axis=-1).astype(jnp.float32)
    h1 = _leaky_relu(x @ w1 + b1)
    h2 = _leaky_relu(h1 @ w2 + b2)
    return h2 @ w3 + b3 + prev_states


def reference_forward_bf16(prev_states, actions, params):
    """Mirrors the kernel's bf16-operand / f32-accumulate matmuls (tight comparison)."""
    w1, b1, w2, b2, w3, b3 = params
    mm = lambda a, w: jnp.dot(a.astype(jnp.bfloat16), w.astype(jnp.bfloat16),
                              preferred_element_type=jnp.float32)
    x = jnp.concatenate([prev_states, actions], axis=-1).astype(jnp.float32)
    h1 = _leaky_relu(mm(x, w1) + b1)
    h2 = _leaky_relu(mm(h1, w2) + b2)
    return mm(h2, w3) + b3 + prev_states


if __name__ == "__main__":
    # Params(state_size, action_size, hidden_size1, hidden_size2)
    B, STATE, ACTION, H1, H2 = 8, 16, 8, 32, 32

    key = jax.random.PRNGKey(0)
    k_ps, k_act, k_par = jax.random.split(key, 3)
    prev_states = jax.random.normal(k_ps, (B, STATE), jnp.float32)
    actions = jax.random.normal(k_act, (B, ACTION), jnp.float32)

    params = make_params(k_par, STATE, ACTION, H1, H2)   # logical f32 params
    kparams = pack_params(params, STATE)                 # split / bf16 kernel params

    fwd = jax.jit(predictor_forward)
    out = jax.block_until_ready(fwd(prev_states, actions, kparams))
    assert out.shape == (B, STATE)

    ref_bf16 = reference_forward_bf16(prev_states, actions, params)
    ref_f32 = reference_forward_f32(prev_states, actions, params)
    assert jnp.allclose(out, ref_bf16, atol=2e-3, rtol=2e-3), \
        float(jnp.max(jnp.abs(out - ref_bf16)))
    assert jnp.allclose(out, ref_f32, atol=5e-2, rtol=5e-2), \
        float(jnp.max(jnp.abs(out - ref_f32)))

    print("KERNEL_OK")
</pallas_src>

<mosaic_0001>
module attributes {stable_mosaic.version = 11 : i64} {
  func.func @predictor_kernel(%arg0: i32, %arg1: memref<8x16xf32, #tpu.memory_space<vmem>>, %arg2: memref<8x8xf32, #tpu.memory_space<vmem>>, %arg3: memref<16x32xbf16, #tpu.memory_space<vmem>>, %arg4: memref<8x32xbf16, #tpu.memory_space<vmem>>, %arg5: memref<1x32xf32, #tpu.memory_space<vmem>>, %arg6: memref<32x32xbf16, #tpu.memory_space<vmem>>, %arg7: memref<1x32xf32, #tpu.memory_space<vmem>>, %arg8: memref<32x16xbf16, #tpu.memory_space<vmem>>, %arg9: memref<1x16xf32, #tpu.memory_space<vmem>>, %arg10: memref<8x16xf32, #tpu.memory_space<vmem>>) attributes {dimension_semantics = [#tpu.dimension_semantics<parallel>], iteration_bounds = array<i64: 1>, scalar_prefetch = 0 : i64, scratch_operands = 0 : i64, tpu.core_type = #tpu.core_type<tc>, window_params = [{transform_indices = @transform_0, window_bounds = array<i64: 8, 16>}, {transform_indices = @transform_1, window_bounds = array<i64: 8, 8>}, {pipeline_mode = #tpu.pipeline_mode<synchronous>, transform_indices = @transform_2, window_bounds = array<i64: 16, 32>}, {pipeline_mode = #tpu.pipeline_mode<synchronous>, transform_indices = @transform_3, window_bounds = array<i64: 8, 32>}, {pipeline_mode = #tpu.pipeline_mode<synchronous>, transform_indices = @transform_4, window_bounds = array<i64: 1, 32>}, {pipeline_mode = #tpu.pipeline_mode<synchronous>, transform_indices = @transform_5, window_bounds = array<i64: 32, 32>}, {pipeline_mode = #tpu.pipeline_mode<synchronous>, transform_indices = @transform_6, window_bounds = array<i64: 1, 32>}, {pipeline_mode = #tpu.pipeline_mode<synchronous>, transform_indices = @transform_7, window_bounds = array<i64: 32, 16>}, {pipeline_mode = #tpu.pipeline_mode<synchronous>, transform_indices = @transform_8, window_bounds = array<i64: 1, 16>}, {transform_indices = @transform_9, window_bounds = array<i64: 8, 16>}]} {
    %c0 = arith.constant 0 : index
    %c0_0 = arith.constant 0 : index
    %0 = vector.load %arg1[%c0, %c0_0] : memref<8x16xf32, #tpu.memory_space<vmem>>, vector<8x16xf32>
    %c0_1 = arith.constant 0 : index
    %c0_2 = arith.constant 0 : index
    %1 = vector.load %arg2[%c0_1, %c0_2] : memref<8x8xf32, #tpu.memory_space<vmem>>, vector<8x8xf32>
    %2 = arith.truncf %0 : vector<8x16xf32> to vector<8x16xbf16>
    %c0_3 = arith.constant 0 : index
    %c0_4 = arith.constant 0 : index
    %3 = vector.load %arg3[%c0_3, %c0_4] : memref<16x32xbf16, #tpu.memory_space<vmem>>, vector<16x32xbf16>
    %cst = arith.constant dense<0.000000e+00> : vector<8x32xf32>
    %4 = tpu.matmul %2, %3, %cst {dimension_numbers = #tpu.dot_dimension_numbers<[1], [0], [0], [1], [0, 0, 1, 1], [], []>} : vector<8x16xbf16>, vector<16x32xbf16>, vector<8x32xf32> -> vector<8x32xf32>
    %5 = arith.truncf %1 : vector<8x8xf32> to vector<8x8xbf16>
    %c0_5 = arith.constant 0 : index
    %c0_6 = arith.constant 0 : index
    %6 = vector.load %arg4[%c0_5, %c0_6] : memref<8x32xbf16, #tpu.memory_space<vmem>>, vector<8x32xbf16>
    %cst_7 = arith.constant dense<0.000000e+00> : vector<8x32xf32>
    %7 = tpu.matmul %5, %6, %cst_7 {dimension_numbers = #tpu.dot_dimension_numbers<[1], [0], [0], [1], [0, 0, 1, 1], [], []>} : vector<8x8xbf16>, vector<8x32xbf16>, vector<8x32xf32> -> vector<8x32xf32>
    %8 = arith.addf %4, %7 : vector<8x32xf32>
    %c0_8 = arith.constant 0 : index
    %c0_9 = arith.constant 0 : index
    %9 = vector.load %arg5[%c0_8, %c0_9] : memref<1x32xf32, #tpu.memory_space<vmem>>, vector<1x32xf32>
    %10 = vector.broadcast %9 : vector<1x32xf32> to vector<8x32xf32>
    %11 = arith.addf %8, %10 : vector<8x32xf32>
    %cst_10 = arith.constant 0.000000e+00 : f32
    %12 = vector.broadcast %cst_10 : f32 to vector<8x32xf32>
    %13 = arith.cmpf ogt, %11, %12 : vector<8x32xf32>
    %cst_11 = arith.constant 0.00999999977 : f32
    %14 = vector.broadcast %cst_11 : f32 to vector<8x32xf32>
    %15 = arith.mulf %14, %11 : vector<8x32xf32>
    %16 = arith.select %13, %11, %15 : vector<8x32xi1>, vector<8x32xf32>
    %17 = arith.truncf %16 : vector<8x32xf32> to vector<8x32xbf16>
    %c0_12 = arith.constant 0 : index
    %c0_13 = arith.constant 0 : index
    %18 = vector.load %arg6[%c0_12, %c0_13] : memref<32x32xbf16, #tpu.memory_space<vmem>>, vector<32x32xbf16>
    %cst_14 = arith.constant dense<0.000000e+00> : vector<8x32xf32>
    %19 = tpu.matmul %17, %18, %cst_14 {dimension_numbers = #tpu.dot_dimension_numbers<[1], [0], [0], [1], [0, 0, 1, 1], [], []>} : vector<8x32xbf16>, vector<32x32xbf16>, vector<8x32xf32> -> vector<8x32xf32>
    %c0_15 = arith.constant 0 : index
    %c0_16 = arith.constant 0 : index
    %20 = vector.load %arg7[%c0_15, %c0_16] : memref<1x32xf32, #tpu.memory_space<vmem>>, vector<1x32xf32>
    %21 = vector.broadcast %20 : vector<1x32xf32> to vector<8x32xf32>
    %22 = arith.addf %19, %21 : vector<8x32xf32>
    %cst_17 = arith.constant 0.000000e+00 : f32
    %23 = vector.broadcast %cst_17 : f32 to vector<8x32xf32>
    %24 = arith.cmpf ogt, %22, %23 : vector<8x32xf32>
    %cst_18 = arith.constant 0.00999999977 : f32
    %25 = vector.broadcast %cst_18 : f32 to vector<8x32xf32>
    %26 = arith.mulf %25, %22 : vector<8x32xf32>
    %27 = arith.select %24, %22, %26 : vector<8x32xi1>, vector<8x32xf32>
    %28 = arith.truncf %27 : vector<8x32xf32> to vector<8x32xbf16>
    %c0_19 = arith.constant 0 : index
    %c0_20 = arith.constant 0 : index
    %29 = vector.load %arg8[%c0_19, %c0_20] : memref<32x16xbf16, #tpu.memory_space<vmem>>, vector<32x16xbf16>
    %cst_21 = arith.constant dense<0.000000e+00> : vector<8x16xf32>
    %30 = tpu.matmul %28, %29, %cst_21 {dimension_numbers = #tpu.dot_dimension_numbers<[1], [0], [0], [1], [0, 0, 1, 1], [], []>} : vector<8x32xbf16>, vector<32x16xbf16>, vector<8x16xf32> -> vector<8x16xf32>
    %c0_22 = arith.constant 0 : index
    %c0_23 = arith.constant 0 : index
    %31 = vector.load %arg9[%c0_22, %c0_23] : memref<1x16xf32, #tpu.memory_space<vmem>>, vector<1x16xf32>
    %32 = vector.broadcast %31 : vector<1x16xf32> to vector<8x16xf32>
    %33 = arith.addf %30, %32 : vector<8x16xf32>
    %34 = arith.addf %33, %0 : vector<8x16xf32>
    %c0_24 = arith.constant 0 : index
    %c0_25 = arith.constant 0 : index
    %35 = vector.load %arg10[%c0_24, %c0_25] : memref<8x16xf32, #tpu.memory_space<vmem>>, vector<8x16xf32>
    tpu.vector_store %arg10[%c0_24, %c0_25], %34 {strides = array<i32>} : memref<8x16xf32, #tpu.memory_space<vmem>>, vector<8x16xf32>,
    return
  }
  func.func @transform_0(%arg0: i32) -> (i32, i32) {
    %c0_i32 = arith.constant 0 : i32
    %c0_i32_0 = arith.constant 0 : i32
    return %arg0, %c0_i32 : i32, i32
  }
  func.func @transform_1(%arg0: i32) -> (i32, i32) {
    %c0_i32 = arith.constant 0 : i32
    %c0_i32_0 = arith.constant 0 : i32
    return %arg0, %c0_i32 : i32, i32
  }
  func.func @transform_2(%arg0: i32) -> (i32, i32) {
    %c0_i32 = arith.constant 0 : i32
    %c0_i32_0 = arith.constant 0 : i32
    %c0_i32_1 = arith.constant 0 : i32
    return %c0_i32, %c0_i32_0 : i32, i32
  }
  func.func @transform_3(%arg0: i32) -> (i32, i32) {
    %c0_i32 = arith.constant 0 : i32
    %c0_i32_0 = arith.constant 0 : i32
    %c0_i32_1 = arith.constant 0 : i32
    return %c0_i32, %c0_i32_0 : i32, i32
  }
  func.func @transform_4(%arg0: i32) -> (i32, i32) {
    %c0_i32 = arith.constant 0 : i32
    %c0_i32_0 = arith.constant 0 : i32
    %c0_i32_1 = arith.constant 0 : i32
    return %c0_i32, %c0_i32_0 : i32, i32
  }
  func.func @transform_5(%arg0: i32) -> (i32, i32) {
    %c0_i32 = arith.constant 0 : i32
    %c0_i32_0 = arith.constant 0 : i32
    %c0_i32_1 = arith.constant 0 : i32
    return %c0_i32, %c0_i32_0 : i32, i32
  }
  func.func @transform_6(%arg0: i32) -> (i32, i32) {
    %c0_i32 = arith.constant 0 : i32
    %c0_i32_0 = arith.constant 0 : i32
    %c0_i32_1 = arith.constant 0 : i32
    return %c0_i32, %c0_i32_0 : i32, i32
  }
  func.func @transform_7(%arg0: i32) -> (i32, i32) {
    %c0_i32 = arith.constant 0 : i32
    %c0_i32_0 = arith.constant 0 : i32
    %c0_i32_1 = arith.constant 0 : i32
    return %c0_i32, %c0_i32_0 : i32, i32
  }
  func.func @transform_8(%arg0: i32) -> (i32, i32) {
    %c0_i32 = arith.constant 0 : i32
    %c0_i32_0 = arith.constant 0 : i32
    %c0_i32_1 = arith.constant 0 : i32
    return %c0_i32, %c0_i32_0 : i32, i32
  }
  func.func @transform_9(%arg0: i32) -> (i32, i32) {
    %c0_i32 = arith.constant 0 : i32
    %c0_i32_0 = arith.constant 0 : i32
    return %arg0, %c0_i32 : i32, i32
  }
}

</mosaic_0001>

<bundles_post_ra>
// kernel: predictor_forward.1
= control target key start
LH: loop header
LB: loop body
LE: loop exit
PB: predicated region body
PF: predicated region fallthrough
CT: control target
= control target key end

     0   :  { %14 = vsyncpa [#allocation3], 0  ;;  %s470_s0 = inlined_call_operand.vmem [shape: f32[8,16], index: 0, kind: input, shape index: {}]   ;;  %s471_s1 = inlined_call_operand.hbm [shape: f32[8,8], index: 1, kind: input, shape index: {}]   ;;  %s472_s2 = inlined_call_operand.hbm [shape: bf16[16,32], index: 2, kind: input, shape index: {}]   ;;  %s473_s3 = inlined_call_operand.vmem [shape: bf16[8,32], index: 3, kind: input, shape index: {}]   ;;  %s474_s4 = inlined_call_operand.hbm [shape: f32[1,32], index: 4, kind: input, shape index: {}]   ;;  %s475_s5 = inlined_call_operand.vmem [shape: bf16[32,32], index: 5, kind: input, shape index: {}]   ;;  %s476_s6 = inlined_call_operand.vmem [shape: f32[1,32], index: 6, kind: input, shape index: {}]   ;;  %s477_s7 = inlined_call_operand.vmem [shape: bf16[32,16], index: 7, kind: input, shape index: {}]   ;;  %s478_s8 = inlined_call_operand.vmem [shape: f32[1,16], index: 8, kind: input, shape index: {}]   ;;  %s479_s9 = inlined_call_operand.hbm [shape: f32[8,16], index: 9, kind: output, shape index: {}]  }
   0x1   :  { %15 = vsyncpa [#allocation6], 0  ;;  %s34_s11 = sshll.u32 %s472_s2, 4  ;;  %s35_s11 = int_to_ptr.hbm [resolvable:$true] %s34_s11 }
   0x2   :  { %16 = vsyncpa [#allocation4], 0  ;;  %s374_s12 = smov [#allocation5]   ;;  %s24_s16 = sshll.u32 %s471_s1, 4  ;;  %s25_s16 = int_to_ptr.hbm [resolvable:$true] %s24_s16 }
   0x3   :  { %s36_s13 = sshll.u32 %s374_s12, 4  ;;  %s375_s17 = smov 64   ;;  %s37_s13 = int_to_ptr.vmem [resolvable:$true] %s36_s13 }
   0x4   :  { %s376_s18 = smov 4   ;;  %s377_s19 = smov [#allocation2]  }
   0x5   :  { %42 = dma.hbm_to_vmem [thread:$0]  %s35_s11, 128, %s37_s13, [#allocation6], %s375_s17, %s375_s17, %s376_s18  }
   0x6   :  { %s26_s20 = sshll.u32 %s377_s19, 4  ;;  %s50_s23 = sshll.u32 %s474_s4, 4  ;;  %s27_s20 = int_to_ptr.vmem [resolvable:$true] %s26_s20  ;;  %s51_s23 = int_to_ptr.hbm [resolvable:$true] %s50_s23 }
   0x7   :  { %29 = dma.hbm_to_vmem [thread:$0]  %s25_s16, 128, %s27_s20, [#allocation3]  }
   0x8   :  { %s378_s2 = smov [#allocation7]  }
   0x9   :  { %s52_s24 = sshll.u32 %s378_s2, 4  ;;  %s53_s24 = int_to_ptr.vmem [resolvable:$true] %s52_s24 }
   0xa   :  { %55 = dma.hbm_to_vmem [thread:$0]  %s51_s23, 16, %s53_s24, [#allocation6]  }
   0xb   :  { %368 = dma.done.wait [#allocation3], 128  }
   0xc   :  { %369 = vsyncadd [#allocation3], 4294967168 }
   0xd   :  { %370 = dma.done.wait [#allocation6], 144  }
   0xe   :  { %371 = vsyncadd [#allocation6], 4294967152  ;;  %vm88_vm0 = vcmask 1043456   ;;  %v83_v0 = vld [vmem:[%s473_s3] sm:$0xf]  ;;  %v258_v1 = vld [vmem:[#allocation5] sm:$0xff] }
   0xf   :  { %v78_v2 = vld [vmem:[#allocation2] sm:$0xff]  ;;  %v90_v3 = vsel %vm88_vm0, %v83_v0, 0  ;;  %122 = vmatpush.bf16.msra.mxu1 %v258_v1  ;;  %vm84_vm1 = vcmask 64512   ;;  %vm111_vm2 = vcmask 130048   ;;  %v260_v7 = vld [vmem:[%s475_s5 + $0x8] sm:$0xff]  ;;  %vm157_vm4 = vcmask 261120  }
  0x10   :  { %v82_v4 = vpack.c.bf16 %v78_v2, %v78_v2  ;;  %v77_v5 = vld [vmem:[%s470_s0] sm:$0xff]  ;;  %99 = vmatpush.bf16.msra.mxu0 %v90_v3  ;;  %167 = vmatpush.bf16.msra.mxu2 %v260_v7  ;;  %v269_v9 = vld [vmem:[#allocation7] ss:$0 sm:$0xff]  ;;  %v262_v19 = vld [vmem:[%s477_s7 + $0x8] sm:$0xff] }
  0x11   :  { %v79_v6 = vpack.c.bf16 %v77_v5, %v77_v5  ;;  %v259_v8 = vld [vmem:[%s475_s5] sm:$0xff]  ;;  %207 = vmatpush.bf16.msra.mxu3 %v262_v19 }
  0x12   :  { %v261_v20 = vld [vmem:[%s477_s7] sm:$0xff]  ;;  %s379_s7 = smov [#allocation8]  }
  0x13   :  { %234 = vmatmul.msk.bf16.vlgmr.msra.gmra.mxu0 %vm84_vm1, %v82_v4  ;;  %239 = vmatmul.msk.bf16.vlgmr.msra.gmra.mxu1 %vm111_vm2, %v79_v6  ;;  %v270_v21 = vld [vmem:[%s476_s6] ss:$0 sm:$0xff]  ;;  %s221_s15 = sshll.u32 %s379_s7, 4  ;;  %s223_s6 = sshll.u32 %s479_s9, 4  ;;  %s222_s15 = int_to_ptr.vmem [resolvable:$true] %s221_s15  ;;  %s224_s6 = int_to_ptr.hbm [resolvable:$true] %s223_s6 }
  0x14   :  { %168 = vmatpush.bf16.msra.mxu2 %v259_v8  ;;  %v271_v28 = vld [vmem:[%s478_s8] ss:$0 sm:$0xff] }
  0x15   :  { %208 = vmatpush.bf16.msra.mxu3 %v261_v20 }
  0x90   :  { %v101_v10 = vpop.f32.mrf.mxu0  ;;  %v124_v11 = vpop.f32.mrf.mxu1 }
  0x91   :  { %v125_v12 = vadd.f32 %v124_v11, %v101_v10 }
  0x93   :  { %v132_v13 = vadd.f32 %v269_v9, %v125_v12 }
  0x95   :  { %v134_v14 = vmul.f32 0.01, %v132_v13  ;;  %vm133_vm3 = vcmp.gt.f32.partialorder %v132_v13, 0.0 }
  0x97   :  { %v135_v15 = vsel %vm133_vm3, %v132_v13, %v134_v14 }
  0x98   :  { %v103_v16 = vpop.f32.mrf.mxu0  ;;  %v126_v17 = vpop.f32.mrf.mxu1  ;;  %v136_v18 = vpack.c.bf16 %v135_v15, %v135_v15 }
  0x9a   :  { %248 = vmatmul.msk.bf16.vlgmr.msra.gmra.mxu2 %vm157_vm4, %v136_v18 }
 0x11d   :  { %v170_v22 = vpop.f32.mrf.mxu2 }
 0x11e   :  { %v171_v23 = vadd.f32 %v270_v21, %v170_v22 }
 0x120   :  { %vm174_vm5 = vcmp.gt.f32.partialorder %v171_v23, 0.0  ;;  %v175_v24 = vmul.f32 0.01, %v171_v23 }
 0x122   :  { %v176_v25 = vsel %vm174_vm5, %v171_v23, %v175_v24 }
 0x123   :  { %v177_v26 = vpack.c.bf16 %v176_v25, %v176_v25 }
 0x125   :  { %v172_v27 = vpop.f32.mrf.mxu2  ;;  %257 = vmatmul.msk.bf16.vlgmr.msra.gmra.mxu3 %vm157_vm4, %v177_v26 }
 0x1a8   :  { %v210_v29 = vpop.f32.mrf.mxu3 }
 0x1a9   :  { %v211_v30 = vadd.f32 %v271_v28, %v210_v29 }
 0x1ab   :  { %v214_v31 = vadd.f32 %v211_v30, %v77_v5 }
 0x1ad   :  { %215 = vst.msk [vmem:[#allocation8] sm:$0xff] %vm111_vm2, %v214_v31 }
 0x1ae   :  { %226 = dma.vmem_to_hbm [thread:$0]  %s222_s15, 128, %s224_s6, [#allocation4]  }
 0x1b0   :  { %v212_v32 = vpop.f32.mrf.mxu3 }
 0x1b1   :  { %372 = dma.done.wait [#allocation4], 128  }
 0x1b2   :  { %373 = vsyncadd [#allocation4], 4294967168 }
 0x1b3   :  { %231 = vsyncpa [#allocation3], 1 }
 0x1b4   :  { %232 = vsyncpa [#allocation6], 1 }
 0x1b5   :  { %233 = vsyncpa [#allocation4], 1 }

</bundles_post_ra>
